<compile_context>
chip_gen: v6e
topology: v6e:2x2x1
jax: 0.10.0
libtpu: 0.0.40
codegen_flags: <defaults>
</compile_context>

<pallas_src>
import jax
import jax.numpy as jnp
from jax.experimental import pallas as pl
from jax.experimental.pallas import tpu as pltpu

# ----------------------------- model dims -----------------------------------
F_IN = 6      # input features per timestep: name(1), nd uses first 2, workload = last 4
WL = 4        # workload feature dim  (Encoder(4))
Z = 4         # latent dim
H_NS = 16     # NSEncoder hidden
H_ND = 16     # NDEncoder hidden
H_ENC = 32    # Encoder hidden
H_DEC = 32    # Decoder hidden

XE_ROWS = F_IN + Z            # 10 : merged [x(6) ; eps(4)] feature-major rows
K_ENC = H_NS + H_ND + WL      # 36 : fused encoder contraction dim
K_ENC_PAD = 40                # padded to a multiple of 8

# packed output rows: [out(0:4) ; z(4:8) ; wl_rec(8:12) ; mu(12:16) ; log_var(16:20)]
PACK_ROWS = 20
O_OUT, O_Z, O_WLR, O_MU, O_LV = 0, 4, 8, 12, 16

TILE_N_MAX = 8192   # rows (lanes) per grid step; lane-dense blocks are small


def _cdiv(a, b):
  return -(-a // b)


def _round_up(a, b):
  return _cdiv(a, b) * b


# ----------------------------- Pallas kernel --------------------------------
def adnn_kernel(
    xe_ref,
    w_ns_ref, b_ns_ref,
    w_nd_ref, b_nd_ref,
    w_enc_ref, b_e_ref,
    w_mulv_ref, b_mulv_ref,
    w_d1_ref, b_d1_ref,
    w_d2_ref, b_d2_ref,
    out_ref,
):
  xe = xe_ref[...]                    # (10, tile_n), feature-major (rows on lanes)
  tile_n = xe.shape[1]
  name = xe[0:1, :]                   # (1, tile_n)    x[:, :, 0]
  wl_in = xe[2:6, :]                  # (4, tile_n)    x[:, :, 2:]
  eps = xe[6:10, :]                   # (4, tile_n)

  # NSEncoder (K=1) / NDEncoder (K=2): VPU broadcast FMAs, lanes fully occupied.
  ns = jnp.maximum(w_ns_ref[...] * name + b_ns_ref[...], 0.0)             # (16, tile_n)
  nd = jnp.maximum(w_nd_ref[:, 0:1] * xe[0:1, :]
                   + w_nd_ref[:, 1:2] * xe[1:2, :]
                   + b_nd_ref[...], 0.0)                                   # (16, tile_n)

  # Encoder: ONE fused MXU matmul over stacked features [ns ; nd ; wl ; 0-pad].
  zpad = jnp.zeros((K_ENC_PAD - K_ENC, tile_n), jnp.float32)
  stack = jnp.concatenate([ns, nd, wl_in, zpad], axis=0)                   # (40, tile_n)
  h = jnp.maximum(
      jnp.dot(w_enc_ref[...], stack, preferred_element_type=jnp.float32)
      + b_e_ref[...], 0.0)                                                 # (32, tile_n)

  # Fused mu / log_var head: one (8, 32) @ (32, tile_n) matmul.
  mulv = (jnp.dot(w_mulv_ref[...], h, preferred_element_type=jnp.float32)
          + b_mulv_ref[...])                                               # (8, tile_n)
  mu = mulv[0:Z, :]
  log_var = mulv[Z:2 * Z, :]

  # Decoder: reparameterize then decode workload.
  z = mu + jnp.exp(0.5 * log_var) * eps                                    # (4, tile_n)
  hd = jnp.maximum(
      jnp.dot(w_d1_ref[...], z, preferred_element_type=jnp.float32)
      + b_d1_ref[...], 0.0)                                                # (32, tile_n)
  wl_rec = (jnp.dot(w_d2_ref[...], hd, preferred_element_type=jnp.float32)
            + b_d2_ref[...])                                               # (4, tile_n)
  out = jax.nn.sigmoid(wl_rec)

  # Lane-dense packed output: sub-slice stores (lane axis always full -> unmasked).
  out_ref[O_OUT:O_OUT + WL, :] = out
  out_ref[O_Z:O_Z + Z, :] = z
  out_ref[O_WLR:O_WLR + WL, :] = wl_rec
  out_ref[O_MU:O_MU + 2 * Z, :] = mulv          # [mu ; log_var] in one 8-row store


# ----------------------------- params ---------------------------------------
def init_params(key):
  ks = jax.random.split(key, 9)
  s = lambda k, shape, fan_in: (jax.random.normal(k, shape, jnp.float32)
                                * (1.0 / jnp.sqrt(fan_in)))
  params = dict(
      w_ns=s(ks[0], (1, H_NS), 1.0),        b_ns=jnp.zeros((1, H_NS), jnp.float32),
      w_nd=s(ks[1], (2, H_ND), 2.0),        b_nd=jnp.zeros((1, H_ND), jnp.float32),
      w_e_wl=s(ks[2], (WL, H_ENC), WL),     w_e_ns=s(ks[3], (H_NS, H_ENC), H_NS),
      w_e_nd=s(ks[4], (H_ND, H_ENC), H_ND), b_e=jnp.zeros((1, H_ENC), jnp.float32),
      w_mu=s(ks[5], (H_ENC, Z), H_ENC),     b_mu=jnp.zeros((1, Z), jnp.float32),
      w_lv=s(ks[6], (H_ENC, Z), H_ENC),     b_lv=jnp.zeros((1, Z), jnp.float32),
      w_d1=s(ks[7], (Z, H_DEC), Z),         b_d1=jnp.zeros((1, H_DEC), jnp.float32),
      w_d2=s(ks[8], (H_DEC, WL), H_DEC),    b_d2=jnp.zeros((1, WL), jnp.float32),
  )
  return params


# ----------------------------- wrapper ---------------------------------------
@jax.jit
def adnn_forward(x, eps, params):
  """x: (B, T, F_IN) float32, eps: (B, T, Z) float32."""
  B, T, F = x.shape
  N = B * T

  # Merge x and eps into ONE feature-major operand: (10, N), rows on lanes.
  xe = jnp.concatenate([x.reshape(N, F), eps.reshape(N, Z)], axis=1)       # (N, 10)
  xe_t = xe.T                                                              # (10, N)

  # Balanced, 128-aligned row tiling (padding waste < one tile).
  n128 = _round_up(N, 128)
  num_tiles = _cdiv(n128, TILE_N_MAX)
  tile_n = _round_up(_cdiv(n128, num_tiles), 128)
  n_pad = num_tiles * tile_n
  if n_pad != N:
    xe_t = jnp.pad(xe_t, ((0, 0), (0, n_pad - N)))

  # Pre-transposed / fused weights (feature-major contractions: W.T @ act).
  w_enc_t = jnp.concatenate(
      [params["w_e_ns"].T, params["w_e_nd"].T, params["w_e_wl"].T,
       jnp.zeros((H_ENC, K_ENC_PAD - K_ENC), jnp.float32)], axis=1)        # (32, 40)
  w_mulv_t = jnp.concatenate([params["w_mu"], params["w_lv"]], axis=1).T   # (8, 32)
  b_mulv_t = jnp.concatenate([params["b_mu"], params["b_lv"]], axis=1).T   # (8, 1)
  weights = (
      params["w_ns"].T, params["b_ns"].T,        # (16,1), (16,1)
      params["w_nd"].T, params["b_nd"].T,        # (16,2), (16,1)
      w_enc_t, params["b_e"].T,                  # (32,40), (32,1)
      w_mulv_t, b_mulv_t,                        # (8,32), (8,1)
      params["w_d1"].T, params["b_d1"].T,        # (32,4), (32,1)
      params["w_d2"].T, params["b_d2"].T,        # (4,32), (4,1)
  )

  feat_spec = pl.BlockSpec((XE_ROWS, tile_n), lambda i: (0, i))
  out_spec = pl.BlockSpec((PACK_ROWS, tile_n), lambda i: (0, i))
  const_spec = lambda a: pl.BlockSpec(a.shape, lambda i: (0, 0))   # resident weights
  in_specs = [feat_spec] + [const_spec(w) for w in weights]

  flops_per_row = 2 * (H_NS + 2 * H_ND + H_ENC * K_ENC_PAD
                       + 2 * Z * H_ENC + Z * H_DEC + H_DEC * WL) + 64
  cost = pl.CostEstimate(
      flops=flops_per_row * n_pad,
      transcendentals=2 * Z * n_pad,
      bytes_accessed=4 * (XE_ROWS + PACK_ROWS) * n_pad + 16 * 1024)

  packed = pl.pallas_call(
      adnn_kernel,
      grid=(num_tiles,),
      out_shape=jax.ShapeDtypeStruct((PACK_ROWS, n_pad), jnp.float32),
      in_specs=in_specs,
      out_specs=out_spec,
      compiler_params=pltpu.CompilerParams(
          dimension_semantics=("parallel",),     # row tiles independent (megacore)
          vmem_limit_bytes=32 * 1024 * 1024),
      cost_estimate=cost,
  )(xe_t, *weights)

  res = packed[:, :N].T                          # (N, 20): single lane->row transpose
  out = res[:, O_OUT:O_OUT + WL].reshape(B, T, WL)
  z = res[:, O_Z:O_Z + Z].reshape(B, T, Z)
  wl_rec = res[:, O_WLR:O_WLR + WL].reshape(B, T, WL)
  mu = res[:, O_MU:O_MU + Z].reshape(B, T, Z)
  log_var = res[:, O_LV:O_LV + Z].reshape(B, T, Z)
  return out, z, wl_rec, mu, log_var


# ----------------------------- pure-JAX reference ----------------------------
def adnn_reference(x, eps, params):
  name = x[..., 0:1]
  nd_in = x[..., 0:2]
  wl_in = x[..., 2:6]
  ns = jax.nn.relu(name @ params["w_ns"] + params["b_ns"])
  nd = jax.nn.relu(nd_in @ params["w_nd"] + params["b_nd"])
  h = jax.nn.relu(wl_in @ params["w_e_wl"] + ns @ params["w_e_ns"]
                  + nd @ params["w_e_nd"] + params["b_e"])
  mu = h @ params["w_mu"] + params["b_mu"]
  log_var = h @ params["w_lv"] + params["b_lv"]
  z = mu + jnp.exp(0.5 * log_var) * eps
  hd = jax.nn.relu(z @ params["w_d1"] + params["b_d1"])
  wl_rec = hd @ params["w_d2"] + params["b_d2"]
  out = jax.nn.sigmoid(wl_rec)
  return out, z, wl_rec, mu, log_var


if __name__ == "__main__":
  key = jax.random.PRNGKey(0)
  k_x, k_eps, k_p = jax.random.split(key, 3)

  B, T = 2, 8
  x = jax.random.normal(k_x, (B, T, F_IN), jnp.float32)
  eps = jax.random.normal(k_eps, (B, T, Z), jnp.float32)
  params = init_params(k_p)

  outs = adnn_forward(x, eps, params)
  outs = jax.block_until_ready(outs)

  out, z, wl_rec, mu, log_var = outs
  assert out.shape == (B, T, WL)
  assert z.shape == (B, T, Z)
  assert wl_rec.shape == (B, T, WL)
  assert mu.shape == (B, T, Z)
  assert log_var.shape == (B, T, Z)

  ref = adnn_reference(x, eps, params)
  for got, want in zip(outs, ref):
    assert jnp.allclose(got, want, rtol=1e-4, atol=1e-4)

  print("KERNEL_OK")
</pallas_src>

<mosaic_0001>
module attributes {stable_mosaic.version = 11 : i64} {
  func.func @adnn_kernel(%arg0: i32, %arg1: memref<10x128xf32, #tpu.memory_space<vmem>>, %arg2: memref<16x1xf32, #tpu.memory_space<vmem>>, %arg3: memref<16x1xf32, #tpu.memory_space<vmem>>, %arg4: memref<16x2xf32, #tpu.memory_space<vmem>>, %arg5: memref<16x1xf32, #tpu.memory_space<vmem>>, %arg6: memref<32x40xf32, #tpu.memory_space<vmem>>, %arg7: memref<32x1xf32, #tpu.memory_space<vmem>>, %arg8: memref<8x32xf32, #tpu.memory_space<vmem>>, %arg9: memref<8x1xf32, #tpu.memory_space<vmem>>, %arg10: memref<32x4xf32, #tpu.memory_space<vmem>>, %arg11: memref<32x1xf32, #tpu.memory_space<vmem>>, %arg12: memref<4x32xf32, #tpu.memory_space<vmem>>, %arg13: memref<4x1xf32, #tpu.memory_space<vmem>>, %arg14: memref<20x128xf32, #tpu.memory_space<vmem>>) attributes {dimension_semantics = [#tpu.dimension_semantics<parallel>], iteration_bounds = array<i64: 1>, scalar_prefetch = 0 : i64, scratch_operands = 0 : i64, tpu.core_type = #tpu.core_type<tc>, window_params = [{transform_indices = @transform_0, window_bounds = array<i64: 10, 128>}, {pipeline_mode = #tpu.pipeline_mode<synchronous>, transform_indices = @transform_1, window_bounds = array<i64: 16, 1>}, {pipeline_mode = #tpu.pipeline_mode<synchronous>, transform_indices = @transform_2, window_bounds = array<i64: 16, 1>}, {pipeline_mode = #tpu.pipeline_mode<synchronous>, transform_indices = @transform_3, window_bounds = array<i64: 16, 2>}, {pipeline_mode = #tpu.pipeline_mode<synchronous>, transform_indices = @transform_4, window_bounds = array<i64: 16, 1>}, {pipeline_mode = #tpu.pipeline_mode<synchronous>, transform_indices = @transform_5, window_bounds = array<i64: 32, 40>}, {pipeline_mode = #tpu.pipeline_mode<synchronous>, transform_indices = @transform_6, window_bounds = array<i64: 32, 1>}, {pipeline_mode = #tpu.pipeline_mode<synchronous>, transform_indices = @transform_7, window_bounds = array<i64: 8, 32>}, {pipeline_mode = #tpu.pipeline_mode<synchronous>, transform_indices = @transform_8, window_bounds = array<i64: 8, 1>}, {pipeline_mode = #tpu.pipeline_mode<synchronous>, transform_indices = @transform_9, window_bounds = array<i64: 32, 4>}, {pipeline_mode = #tpu.pipeline_mode<synchronous>, transform_indices = @transform_10, window_bounds = array<i64: 32, 1>}, {pipeline_mode = #tpu.pipeline_mode<synchronous>, transform_indices = @transform_11, window_bounds = array<i64: 4, 32>}, {pipeline_mode = #tpu.pipeline_mode<synchronous>, transform_indices = @transform_12, window_bounds = array<i64: 4, 1>}, {transform_indices = @transform_13, window_bounds = array<i64: 20, 128>}]} {
    %c0 = arith.constant 0 : index
    %c0_0 = arith.constant 0 : index
    %0 = vector.load %arg1[%c0, %c0_0] : memref<10x128xf32, #tpu.memory_space<vmem>>, vector<10x128xf32>
    %1 = vector.extract_strided_slice %0 {offsets = [0, 0], sizes = [1, 128], strides = [1, 1]} : vector<10x128xf32> to vector<1x128xf32>
    %2 = vector.extract_strided_slice %0 {offsets = [2, 0], sizes = [4, 128], strides = [1, 1]} : vector<10x128xf32> to vector<4x128xf32>
    %3 = vector.extract_strided_slice %0 {offsets = [6, 0], sizes = [4, 128], strides = [1, 1]} : vector<10x128xf32> to vector<4x128xf32>
    %c0_1 = arith.constant 0 : index
    %c0_2 = arith.constant 0 : index
    %4 = vector.load %arg2[%c0_1, %c0_2] : memref<16x1xf32, #tpu.memory_space<vmem>>, vector<16x1xf32>
    %5 = vector.broadcast %4 : vector<16x1xf32> to vector<16x128xf32>
    %6 = vector.broadcast %1 : vector<1x128xf32> to vector<16x128xf32>
    %7 = arith.mulf %5, %6 : vector<16x128xf32>
    %c0_3 = arith.constant 0 : index
    %c0_4 = arith.constant 0 : index
    %8 = vector.load %arg3[%c0_3, %c0_4] : memref<16x1xf32, #tpu.memory_space<vmem>>, vector<16x1xf32>
    %9 = vector.broadcast %8 : vector<16x1xf32> to vector<16x128xf32>
    %10 = arith.addf %7, %9 : vector<16x128xf32>
    %cst = arith.constant 0.000000e+00 : f32
    %11 = vector.broadcast %cst : f32 to vector<16x128xf32>
    %12 = arith.maximumf %10, %11 : vector<16x128xf32>
    %c0_5 = arith.constant 0 : index
    %c0_6 = arith.constant 0 : index
    %13 = vector.load %arg4[%c0_5, %c0_6] : memref<16x2xf32, #tpu.memory_space<vmem>>, vector<16x1xf32>
    %14 = vector.extract_strided_slice %0 {offsets = [0, 0], sizes = [1, 128], strides = [1, 1]} : vector<10x128xf32> to vector<1x128xf32>
    %15 = vector.broadcast %13 : vector<16x1xf32> to vector<16x128xf32>
    %16 = vector.broadcast %14 : vector<1x128xf32> to vector<16x128xf32>
    %17 = arith.mulf %15, %16 : vector<16x128xf32>
    %c0_7 = arith.constant 0 : index
    %c1 = arith.constant 1 : index
    %18 = vector.load %arg4[%c0_7, %c1] : memref<16x2xf32, #tpu.memory_space<vmem>>, vector<16x1xf32>
    %19 = vector.extract_strided_slice %0 {offsets = [1, 0], sizes = [1, 128], strides = [1, 1]} : vector<10x128xf32> to vector<1x128xf32>
    %20 = vector.broadcast %18 : vector<16x1xf32> to vector<16x128xf32>
    %21 = vector.broadcast %19 : vector<1x128xf32> to vector<16x128xf32>
    %22 = arith.mulf %20, %21 : vector<16x128xf32>
    %23 = arith.addf %17, %22 : vector<16x128xf32>
    %c0_8 = arith.constant 0 : index
    %c0_9 = arith.constant 0 : index
    %24 = vector.load %arg5[%c0_8, %c0_9] : memref<16x1xf32, #tpu.memory_space<vmem>>, vector<16x1xf32>
    %25 = vector.broadcast %24 : vector<16x1xf32> to vector<16x128xf32>
    %26 = arith.addf %23, %25 : vector<16x128xf32>
    %cst_10 = arith.constant 0.000000e+00 : f32
    %27 = vector.broadcast %cst_10 : f32 to vector<16x128xf32>
    %28 = arith.maximumf %26, %27 : vector<16x128xf32>
    %cst_11 = arith.constant 0.000000e+00 : f32
    %29 = vector.broadcast %cst_11 : f32 to vector<4x128xf32>
    %30 = tpu.concatenate %12, %28, %2, %29 in 0 : vector<16x128xf32>, vector<16x128xf32>, vector<4x128xf32>, vector<4x128xf32> -> vector<40x128xf32>
    %c0_12 = arith.constant 0 : index
    %c0_13 = arith.constant 0 : index
    %31 = vector.load %arg6[%c0_12, %c0_13] : memref<32x40xf32, #tpu.memory_space<vmem>>, vector<32x40xf32>
    %cst_14 = arith.constant dense<0.000000e+00> : vector<32x128xf32>
    %32 = tpu.matmul %31, %30, %cst_14 {dimension_numbers = #tpu.dot_dimension_numbers<[1], [0], [0], [1], [0, 0, 1, 1], [], []>} : vector<32x40xf32>, vector<40x128xf32>, vector<32x128xf32> -> vector<32x128xf32>
    %c0_15 = arith.constant 0 : index
    %c0_16 = arith.constant 0 : index
    %33 = vector.load %arg7[%c0_15, %c0_16] : memref<32x1xf32, #tpu.memory_space<vmem>>, vector<32x1xf32>
    %34 = vector.broadcast %33 : vector<32x1xf32> to vector<32x128xf32>
    %35 = arith.addf %32, %34 : vector<32x128xf32>
    %cst_17 = arith.constant 0.000000e+00 : f32
    %36 = vector.broadcast %cst_17 : f32 to vector<32x128xf32>
    %37 = arith.maximumf %35, %36 : vector<32x128xf32>
    %c0_18 = arith.constant 0 : index
    %c0_19 = arith.constant 0 : index
    %38 = vector.load %arg8[%c0_18, %c0_19] : memref<8x32xf32, #tpu.memory_space<vmem>>, vector<8x32xf32>
    %cst_20 = arith.constant dense<0.000000e+00> : vector<8x128xf32>
    %39 = tpu.matmul %38, %37, %cst_20 {dimension_numbers = #tpu.dot_dimension_numbers<[1], [0], [0], [1], [0, 0, 1, 1], [], []>} : vector<8x32xf32>, vector<32x128xf32>, vector<8x128xf32> -> vector<8x128xf32>
    %c0_21 = arith.constant 0 : index
    %c0_22 = arith.constant 0 : index
    %40 = vector.load %arg9[%c0_21, %c0_22] : memref<8x1xf32, #tpu.memory_space<vmem>>, vector<8x1xf32>
    %41 = vector.broadcast %40 : vector<8x1xf32> to vector<8x128xf32>
    %42 = arith.addf %39, %41 : vector<8x128xf32>
    %43 = vector.extract_strided_slice %42 {offsets = [0, 0], sizes = [4, 128], strides = [1, 1]} : vector<8x128xf32> to vector<4x128xf32>
    %44 = vector.extract_strided_slice %42 {offsets = [4, 0], sizes = [4, 128], strides = [1, 1]} : vector<8x128xf32> to vector<4x128xf32>
    %cst_23 = arith.constant 5.000000e-01 : f32
    %45 = vector.broadcast %cst_23 : f32 to vector<4x128xf32>
    %46 = arith.mulf %45, %44 : vector<4x128xf32>
    %47 = math.exp %46 : vector<4x128xf32>
    %48 = arith.mulf %47, %3 : vector<4x128xf32>
    %49 = arith.addf %43, %48 : vector<4x128xf32>
    %c0_24 = arith.constant 0 : index
    %c0_25 = arith.constant 0 : index
    %50 = vector.load %arg10[%c0_24, %c0_25] : memref<32x4xf32, #tpu.memory_space<vmem>>, vector<32x4xf32>
    %cst_26 = arith.constant dense<0.000000e+00> : vector<32x128xf32>
    %51 = tpu.matmul %50, %49, %cst_26 {dimension_numbers = #tpu.dot_dimension_numbers<[1], [0], [0], [1], [0, 0, 1, 1], [], []>} : vector<32x4xf32>, vector<4x128xf32>, vector<32x128xf32> -> vector<32x128xf32>
    %c0_27 = arith.constant 0 : index
    %c0_28 = arith.constant 0 : index
    %52 = vector.load %arg11[%c0_27, %c0_28] : memref<32x1xf32, #tpu.memory_space<vmem>>, vector<32x1xf32>
    %53 = vector.broadcast %52 : vector<32x1xf32> to vector<32x128xf32>
    %54 = arith.addf %51, %53 : vector<32x128xf32>
    %cst_29 = arith.constant 0.000000e+00 : f32
    %55 = vector.broadcast %cst_29 : f32 to vector<32x128xf32>
    %56 = arith.maximumf %54, %55 : vector<32x128xf32>
    %c0_30 = arith.constant 0 : index
    %c0_31 = arith.constant 0 : index
    %57 = vector.load %arg12[%c0_30, %c0_31] : memref<4x32xf32, #tpu.memory_space<vmem>>, vector<4x32xf32>
    %cst_32 = arith.constant dense<0.000000e+00> : vector<4x128xf32>
    %58 = tpu.matmul %57, %56, %cst_32 {dimension_numbers = #tpu.dot_dimension_numbers<[1], [0], [0], [1], [0, 0, 1, 1], [], []>} : vector<4x32xf32>, vector<32x128xf32>, vector<4x128xf32> -> vector<4x128xf32>
    %c0_33 = arith.constant 0 : index
    %c0_34 = arith.constant 0 : index
    %59 = vector.load %arg13[%c0_33, %c0_34] : memref<4x1xf32, #tpu.memory_space<vmem>>, vector<4x1xf32>
    %60 = vector.broadcast %59 : vector<4x1xf32> to vector<4x128xf32>
    %61 = arith.addf %58, %60 : vector<4x128xf32>
    %62 = arith.negf %61 : vector<4x128xf32>
    %63 = math.exp %62 : vector<4x128xf32>
    %cst_35 = arith.constant 1.000000e+00 : f32
    %64 = vector.broadcast %cst_35 : f32 to vector<4x128xf32>
    %65 = arith.addf %64, %63 : vector<4x128xf32>
    %66 = arith.divf %64, %65 : vector<4x128xf32>
    %c0_36 = arith.constant 0 : index
    %c0_37 = arith.constant 0 : index
    %67 = vector.load %arg14[%c0_36, %c0_37] : memref<20x128xf32, #tpu.memory_space<vmem>>, vector<4x128xf32>
    tpu.vector_store %arg14[%c0_36, %c0_37], %66 {strides = array<i32>} : memref<20x128xf32, #tpu.memory_space<vmem>>, vector<4x128xf32>,
    %c4 = arith.constant 4 : index
    %c0_38 = arith.constant 0 : index
    %68 = vector.load %arg14[%c4, %c0_38] : memref<20x128xf32, #tpu.memory_space<vmem>>, vector<4x128xf32>
    tpu.vector_store %arg14[%c4, %c0_38], %49 {strides = array<i32>} : memref<20x128xf32, #tpu.memory_space<vmem>>, vector<4x128xf32>,
    %c8 = arith.constant 8 : index
    %c0_39 = arith.constant 0 : index
    %69 = vector.load %arg14[%c8, %c0_39] : memref<20x128xf32, #tpu.memory_space<vmem>>, vector<4x128xf32>
    tpu.vector_store %arg14[%c8, %c0_39], %61 {strides = array<i32>} : memref<20x128xf32, #tpu.memory_space<vmem>>, vector<4x128xf32>,
    %c12 = arith.constant 12 : index
    %c0_40 = arith.constant 0 : index
    %70 = vector.load %arg14[%c12, %c0_40] : memref<20x128xf32, #tpu.memory_space<vmem>>, vector<8x128xf32>
    tpu.vector_store %arg14[%c12, %c0_40], %42 {strides = array<i32>} : memref<20x128xf32, #tpu.memory_space<vmem>>, vector<8x128xf32>,
    return
  }
  func.func @transform_0(%arg0: i32) -> (i32, i32) {
    %c0_i32 = arith.constant 0 : i32
    %c0_i32_0 = arith.constant 0 : i32
    return %c0_i32, %arg0 : i32, i32
  }
  func.func @transform_1(%arg0: i32) -> (i32, i32) {
    %c0_i32 = arith.constant 0 : i32
    %c0_i32_0 = arith.constant 0 : i32
    %c0_i32_1 = arith.constant 0 : i32
    return %c0_i32, %c0_i32_0 : i32, i32
  }
  func.func @transform_2(%arg0: i32) -> (i32, i32) {
    %c0_i32 = arith.constant 0 : i32
    %c0_i32_0 = arith.constant 0 : i32
    %c0_i32_1 = arith.constant 0 : i32
    return %c0_i32, %c0_i32_0 : i32, i32
  }
  func.func @transform_3(%arg0: i32) -> (i32, i32) {
    %c0_i32 = arith.constant 0 : i32
    %c0_i32_0 = arith.constant 0 : i32
    %c0_i32_1 = arith.constant 0 : i32
    return %c0_i32, %c0_i32_0 : i32, i32
  }
  func.func @transform_4(%arg0: i32) -> (i32, i32) {
    %c0_i32 = arith.constant 0 : i32
    %c0_i32_0 = arith.constant 0 : i32
    %c0_i32_1 = arith.constant 0 : i32
    return %c0_i32, %c0_i32_0 : i32, i32
  }
  func.func @transform_5(%arg0: i32) -> (i32, i32) {
    %c0_i32 = arith.constant 0 : i32
    %c0_i32_0 = arith.constant 0 : i32
    %c0_i32_1 = arith.constant 0 : i32
    return %c0_i32, %c0_i32_0 : i32, i32
  }
  func.func @transform_6(%arg0: i32) -> (i32, i32) {
    %c0_i32 = arith.constant 0 : i32
    %c0_i32_0 = arith.constant 0 : i32
    %c0_i32_1 = arith.constant 0 : i32
    return %c0_i32, %c0_i32_0 : i32, i32
  }
  func.func @transform_7(%arg0: i32) -> (i32, i32) {
    %c0_i32 = arith.constant 0 : i32
    %c0_i32_0 = arith.constant 0 : i32
    %c0_i32_1 = arith.constant 0 : i32
    return %c0_i32, %c0_i32_0 : i32, i32
  }
  func.func @transform_8(%arg0: i32) -> (i32, i32) {
    %c0_i32 = arith.constant 0 : i32
    %c0_i32_0 = arith.constant 0 : i32
    %c0_i32_1 = arith.constant 0 : i32
    return %c0_i32, %c0_i32_0 : i32, i32
  }
  func.func @transform_9(%arg0: i32) -> (i32, i32) {
    %c0_i32 = arith.constant 0 : i32
    %c0_i32_0 = arith.constant 0 : i32
    %c0_i32_1 = arith.constant 0 : i32
    return %c0_i32, %c0_i32_0 : i32, i32
  }
  func.func @transform_10(%arg0: i32) -> (i32, i32) {
    %c0_i32 = arith.constant 0 : i32
    %c0_i32_0 = arith.constant 0 : i32
    %c0_i32_1 = arith.constant 0 : i32
    return %c0_i32, %c0_i32_0 : i32, i32
  }
  func.func @transform_11(%arg0: i32) -> (i32, i32) {
    %c0_i32 = arith.constant 0 : i32
    %c0_i32_0 = arith.constant 0 : i32
    %c0_i32_1 = arith.constant 0 : i32
    return %c0_i32, %c0_i32_0 : i32, i32
  }
  func.func @transform_12(%arg0: i32) -> (i32, i32) {
    %c0_i32 = arith.constant 0 : i32
    %c0_i32_0 = arith.constant 0 : i32
    %c0_i32_1 = arith.constant 0 : i32
    return %c0_i32, %c0_i32_0 : i32, i32
  }
  func.func @transform_13(%arg0: i32) -> (i32, i32) {
    %c0_i32 = arith.constant 0 : i32
    %c0_i32_0 = arith.constant 0 : i32
    return %c0_i32, %arg0 : i32, i32
  }
}

</mosaic_0001>

<bundles_post_ra>
// kernel: adnn_forward.1
= control target key start
LH: loop header
LB: loop body
LE: loop exit
PB: predicated region body
PF: predicated region fallthrough
CT: control target
= control target key end

     0   :  { %v680_v0 = vmov 1   ;;  %v681_v1 = vmov 0   ;;  %vm129_vm0 = vcmask 1043456   ;;  %vm159_vm1 = vcmask 326656   ;;  %s885_s3 = inlined_call_operand.vmem [shape: f32[16,2], index: 3, kind: input, shape index: {}]   ;;  %s886_s0 = inlined_call_operand.vmem [shape: f32[10,128], index: 0, kind: input, shape index: {}]   ;;  %s887_s1 = inlined_call_operand.vmem [shape: f32[16,1], index: 1, kind: input, shape index: {}]   ;;  %s888_s4 = inlined_call_operand.vmem [shape: f32[16,1], index: 4, kind: input, shape index: {}]   ;;  %s889_s2 = inlined_call_operand.vmem [shape: f32[16,1], index: 2, kind: input, shape index: {}]   ;;  %s890_s6 = inlined_call_operand.vmem [shape: f32[32,1], index: 6, kind: input, shape index: {}]   ;;  %s891_s8 = inlined_call_operand.vmem [shape: f32[8,1], index: 8, kind: input, shape index: {}]   ;;  %s892_s5 = inlined_call_operand.vmem [shape: f32[32,40], index: 5, kind: input, shape index: {}]   ;;  %s893_s10 = inlined_call_operand.vmem [shape: f32[32,1], index: 10, kind: input, shape index: {}]   ;;  %s894_s12 = inlined_call_operand.vmem [shape: f32[4,1], index: 12, kind: input, shape index: {}]   ;;  %s895_s7 = inlined_call_operand.vmem [shape: f32[8,32], index: 7, kind: input, shape index: {}]   ;;  %s896_s9 = inlined_call_operand.vmem [shape: f32[32,4], index: 9, kind: input, shape index: {}]   ;;  %s897_s13 = inlined_call_operand.vmem [shape: f32[20,128], index: 13, kind: output, shape index: {}]   ;;  %s898_s11 = inlined_call_operand.vmem [shape: f32[4,32], index: 11, kind: input, shape index: {}]  }
   0x1   :  { %669 = vset.pattern.permute.xlu0 %v680_v0  ;;  %671 = vset.pattern.permute.xlu1 %v681_v1  ;;  %v81_v2 = vld [vmem:[%s885_s3 + $0x8] sm:$0xff]  ;;  %v80_v3 = vld [vmem:[%s885_s3] sm:$0xff]  ;;  %v138_v10 = vld [vmem:[%s890_s6 + $0x18] sm:$0xff]  ;;  %v58_v23 = vlaneseq  ;;  %v682_v58 = vmov 0.0   ;;  %vm683_vm2 = vmmov 0   ;;  %vm268_vm3 = vcmask 261120  }
   0x2   :  { %99 = vperm.xlu0 %669, %v81_v2   ;;  %84 = vperm.xlu1 %671, %v80_v3   ;;  %v44_v4 = vld [vmem:[%s886_s0] sm:$0xff]  ;;  %v47_v5 = vld [vmem:[%s887_s1 + $0x8] sm:$0xff]  ;;  %v137_v16 = vld [vmem:[%s890_s6 + $0x10] sm:$0xff]  ;;  %vm383_vm4 = vcmask 31744   ;;  %vm346_vm5 = vcmask 1045504  }
   0x3   :  { %v766_v6 = vrot.slane %v44_v4, 2  ;;  %v111_v7 = vld [vmem:[%s888_s4 + $0x8] sm:$0xff]  ;;  %v110_v9 = vld [vmem:[%s888_s4] sm:$0xff]  ;;  %v361_v17 = vld [vmem:[%s893_s10 + $0x10] sm:$0xff]  ;;  %v59_v24 = vshrl.u32 %v58_v23, 7  ;;  %635 = vmatprep.subr.mxu1 %v682_v58  ;;  %643 = vmatprep.mubr.msk.f32.mxu1 %vm683_vm2, %v682_v58 }
   0x4   :  { %v65_v8 = vld [vmem:[%s889_s2 + $0x8] sm:$0xff]  ;;  %v46_v11 = vld [vmem:[%s887_s1] sm:$0xff]  ;;  %v362_v20 = vld [vmem:[%s893_s10 + $0x18] sm:$0xff] }
   0x5   :  { %619 = vmatprep.subr.msk.mxu0 %vm129_vm0, %v766_v6  ;;  %v136_v12 = vld [vmem:[%s890_s6 + $0x8] sm:$0xff]  ;;  %v64_v13 = vld [vmem:[%s889_s2] sm:$0xff]  ;;  %v104_v25 = vsub.s32 1, %v59_v24  ;;  %v60_v26 = vsub.s32 0, %v59_v24  ;;  %v133_v56 = vld [vmem:[%s892_s5 + $0x10] sm:$0xff] }
   0x6   :  { %670 = vset.pattern.permute.xlu0 %v681_v1  ;;  %672 = vset.pattern.permute.xlu1 %v680_v0  ;;  %v262_v14 = vld [vmem:[%s891_s8] sm:$0xff]  ;;  %v360_v21 = vld [vmem:[%s893_s10 + $0x8] sm:$0xff]  ;;  %v134_v57 = vld [vmem:[%s892_s5 + $0x18] sm:$0xff] }
   0x7   :  { %89 = vperm.xlu0 %670, %v81_v2   ;;  %95 = vperm.xlu1 %672, %v80_v3   ;;  %v131_v15 = vld [vmem:[%s892_s5] sm:$0xff]  ;;  %v105_v29 = vrot.slane %v44_v4, %v104_v25  ;;  %v61_v30 = vrot.slane %v44_v4, %v60_v26  ;;  %v132_v55 = vld [vmem:[%s892_s5 + $0x8] sm:$0xff] }
   0x8   :  { %620 = vmatpush3.msk.msra.mxu0 %vm129_vm0, %v766_v6  ;;  %629 = vmatprep.mubr.msk.f32.mxu0 %vm159_vm1, %v131_v15  ;;  %v135_v18 = vld [vmem:[%s890_s6] sm:$0xff] }
   0x9   :  { %v359_v19 = vld [vmem:[%s893_s10] sm:$0xff] }
   0xa   :  { %v489_v22 = vld [vmem:[%s894_s12] sm:$0xf] }
   0xb   :  { %673 = vset.pattern.permute.xlu1 %v681_v1  ;;  %55 = vperm.xlu0 %670, %v47_v5  }
   0xc   :  { %119 = vperm.xlu1 %673, %v111_v7  }
   0xf   :  { %73 = vperm.xlu0 %670, %v65_v8  }
  0x10   :  { %114 = vperm.xlu1 %673, %v110_v9  }
  0x13   :  { %156 = vperm.xlu0 %670, %v138_v10  }
  0x14   :  { %50 = vperm.xlu1 %673, %v46_v11  }
  0x17   :  { %146 = vperm.xlu0 %670, %v136_v12   ;;  %v261_v12 = vld [vmem:[%s895_s7] sm:$0xff] }
  0x18   :  { %68 = vperm.xlu1 %673, %v64_v13   ;;  %v355_v13 = vld [vmem:[%s896_s9] sm:$0xff] }
  0x1b   :  { %265 = vperm.xlu0 %670, %v262_v14  }
  0x1c   :  { %151 = vperm.xlu1 %673, %v137_v16  }
  0x1f   :  { %375 = vperm.xlu0 %670, %v361_v17  }
  0x20   :  { %141 = vperm.xlu1 %673, %v135_v18  }
  0x23   :  { %365 = vperm.xlu0 %670, %v359_v19  }
  0x24   :  { %380 = vperm.xlu1 %673, %v362_v20   ;;  %v45_v20 = vld [vmem:[%s886_s0 + $0x8] sm:$0x3] }
  0x28   :  { %370 = vperm.xlu1 %673, %v360_v21   ;;  %v347_v21 = vrot.slane %v45_v20, 2 }
  0x2c   :  { %492 = vperm.xlu1 %673, %v489_v22   ;;  %v348_v22 = vsel %vm346_vm5, %v766_v6, %v347_v21  ;;  %v358_v6 = vld [vmem:[%s896_s9 + $0x18] sm:$0xff] }
  0x7d   :  { %v85_v27 = vpop.permute.xlu1 %84  ;;  %v100_v28 = vpop.permute.xlu0 %99 }
  0x7e   :  { %v107_v31 = vmul.f32 %v105_v29, %v100_v28  ;;  %v92_v39 = vmul.f32 %v85_v27, %v61_v30  ;;  %v356_v27 = vld [vmem:[%s896_s9 + $0x8] sm:$0xff]  ;;  %v357_v28 = vld [vmem:[%s896_s9 + $0x10] sm:$0xff] }
  0x82   :  { %v90_v32 = vpop.permute.xlu0 %89  ;;  %v96_v33 = vpop.permute.xlu1 %95 }
  0x83   :  { %v93_v34 = vmul.f32 %v90_v32, %v61_v30  ;;  %v106_v36 = vmul.f32 %v105_v29, %v96_v33 }
  0x85   :  { %v109_v35 = vadd.f32 %v107_v31, %v93_v34  ;;  %v108_v44 = vadd.f32 %v106_v36, %v92_v39 }
  0x86   :  { %v56_v37 = vpop.permute.xlu0 %55 }
  0x87   :  { %v120_v38 = vpop.permute.xlu1 %119  ;;  %v63_v40 = vmul.f32 %v61_v30, %v56_v37 }
  0x88   :  { %v123_v41 = vadd.f32 %v120_v38, %v109_v35 }
  0x8a   :  { %v125_v42 = vmax.f32 %v123_v41, 0.0  ;;  %v74_v43 = vpop.permute.xlu0 %73 }
  0x8b   :  { %v115_v45 = vpop.permute.xlu1 %114  ;;  %v77_v46 = vadd.f32 %v74_v43, %v63_v40 }
  0x8c   :  { %v122_v47 = vadd.f32 %v115_v45, %v108_v44  ;;  %621 = vmatprep.subr.mxu0 %v125_v42  ;;  %v488_v45 = vld [vmem:[%s898_s11] sm:$0xf] }
  0x8d   :  { %622 = vmatpush3.msra.mxu0 %v125_v42  ;;  %v79_v50 = vmax.f32 %v77_v46, 0.0 }
  0x8e   :  { %v124_v48 = vmax.f32 %v122_v47, 0.0  ;;  %v157_v59 = vpop.permute.xlu0 %156 }
  0x8f   :  { %v51_v49 = vpop.permute.xlu1 %50 }
  0x90   :  { %623 = vmatprep.subr.mxu0 %v124_v48  ;;  %v62_v51 = vmul.f32 %v61_v30, %v51_v49 }
  0x91   :  { %624 = vmatpush3.msra.mxu0 %v124_v48 }
  0x92   :  { %625 = vmatprep.subr.mxu0 %v79_v50  ;;  %v147_v1 = vpop.permute.xlu0 %146 }
  0x93   :  { %v69_v52 = vpop.permute.xlu1 %68  ;;  %626 = vmatpush3.msra.mxu0 %v79_v50 }
  0x94   :  { %v76_v53 = vadd.f32 %v69_v52, %v62_v51 }
  0x96   :  { %v78_v54 = vmax.f32 %v76_v53, 0.0  ;;  %v266_v14 = vpop.permute.xlu0 %265 }
  0x97   :  { %v152_v61 = vpop.permute.xlu1 %151 }
  0x98   :  { %627 = vmatprep.subr.mxu0 %v78_v54 }
  0x99   :  { %628 = vmatpush3.msra.mxu0 %v78_v54 }
  0x9a   :  { %630 = vmatmul.mubr.msk.f32.vlgmr.msra.gmra.mxu0 %vm159_vm1, %v132_v55  ;;  %654 = vmatprep.subr.mxu0 %v682_v58  ;;  %v376_v31 = vpop.permute.xlu0 %375 }
  0x9b   :  { %632 = vmatprep.mubr.msk.f32.mxu0 %vm159_vm1, %v133_v56  ;;  %v142_v7 = vpop.permute.xlu1 %141 }
  0x9e   :  { %633 = vmatmul.mubr.msk.f32.gmra.mxu0 %vm159_vm1, %v134_v57  ;;  %v366_v40 = vpop.permute.xlu0 %365 }
  0x9f   :  { %662 = vmatprep.mubr.msk.f32.mxu0 %vm683_vm2, %v682_v58  ;;  %v381_v29 = vpop.permute.xlu1 %380 }
  0xa3   :  { %v371_v35 = vpop.permute.xlu1 %370 }
  0xa7   :  { %v493_v46 = vpop.permute.xlu1 %492 }
 0x15a   :  { %v631_v60 = vpop.f32.mrf.mxu0 }
 0x15b   :  { %v244_v3 = vadd.f32 %v631_v60, %v147_v1 }
 0x15c   :  { %v238_v62 = vpop.f32.mrf.mxu0 }
 0x15d   :  { %v239_v8 = vadd.f32 %v238_v62, %v142_v7  ;;  %v258_v10 = vmax.f32 %v244_v3, 0.0 }
 0x15e   :  { %v634_v63 = vpop.f32.mrf.mxu0 }
 0x15f   :  { %v254_v0 = vadd.f32 %v634_v63, %v157_v59  ;;  %v257_v11 = vmax.f32 %v239_v8, 0.0 }
 0x160   :  { %v248_v2 = vpop.f32.mrf.mxu0 }
 0x161   :  { %v260_v4 = vmax.f32 %v254_v0, 0.0  ;;  %v249_v5 = vadd.f32 %v248_v2, %v152_v61 }
 0x163   :  { %v259_v9 = vmax.f32 %v249_v5, 0.0  ;;  %636 = vmatpush3.msra.mxu1 %v260_v4 }
 0x164   :  { %637 = vmatprep.subr.mxu1 %v682_v58 }
 0x165   :  { %638 = vmatpush3.msra.mxu1 %v259_v9 }
 0x166   :  { %639 = vmatprep.subr.mxu1 %v682_v58 }
 0x167   :  { %640 = vmatpush3.msra.mxu1 %v258_v10 }
 0x168   :  { %641 = vmatprep.subr.mxu1 %v682_v58 }
 0x169   :  { %642 = vmatpush3.msra.mxu1 %v257_v11 }
 0x16a   :  { %644 = vmatmul.mubr.msk.f32.vlgmr.msra.gmra.mxu1 %vm268_vm3, %v261_v12 }
 0x16b   :  { %648 = vmatprep.mubr.msk.f32.mxu1 %vm383_vm4, %v355_v13 }
 0x22a   :  { %v338_v15 = vpop.f32.mrf.mxu1 }
 0x22b   :  { %v339_v16 = vadd.f32 %v338_v15, %v266_v14 }
 0x22c   :  { %v645_v17 = vpop.f32.mrf.mxu1 }
 0x22d   :  { %v342_v18 = vmul.f32 0.5, %v339_v16  ;;  %577 = vst [vmem:[%s897_s13 + $0xc] sm:$0xff] %v339_v16 }
 0x22f   :  { %v343_v19 = vmul.f32 1.442695, %v342_v18 }
 0x231   :  { %674 = vpow2.f32 %v343_v19 }
 0x23e   :  { %v675_v23 = vpop.eup %674 }
 0x23f   :  { %v350_v24 = vmul.f32 %v675_v23, %v348_v22 }
 0x241   :  { %v352_v25 = vrot.slane %v350_v24, 4 }
 0x243   :  { %v354_v26 = vadd.f32 %v352_v25, %v339_v16 }
 0x245   :  { %575 = vst [vmem:[%s897_s13 + $0x4] sm:$0xf] %v354_v26  ;;  %646 = vmatprep.subr.msk.mxu1 %vm129_vm0, %v354_v26 }
 0x246   :  { %647 = vmatpush3.msk.msra.mxu1 %vm129_vm0, %v354_v26 }
 0x247   :  { %649 = vmatmul.mubr.msk.f32.vlgmr.msra.gmra.mxu1 %vm383_vm4, %v356_v27 }
 0x248   :  { %651 = vmatprep.mubr.msk.f32.mxu1 %vm383_vm4, %v357_v28 }
 0x24b   :  { %652 = vmatmul.mubr.msk.f32.gmra.mxu1 %vm383_vm4, %v358_v6 }
 0x307   :  { %v650_v30 = vpop.f32.mrf.mxu1 }
 0x308   :  { %v471_v37 = vadd.f32 %v650_v30, %v371_v35 }
 0x309   :  { %v465_v32 = vpop.f32.mrf.mxu1 }
 0x30a   :  { %v466_v41 = vadd.f32 %v465_v32, %v366_v40  ;;  %v485_v43 = vmax.f32 %v471_v37, 0.0 }
 0x30b   :  { %v653_v33 = vpop.f32.mrf.mxu1 }
 0x30c   :  { %v481_v34 = vadd.f32 %v653_v33, %v381_v29  ;;  %v484_v44 = vmax.f32 %v466_v41, 0.0 }
 0x30d   :  { %v475_v36 = vpop.f32.mrf.mxu1 }
 0x30e   :  { %v487_v38 = vmax.f32 %v481_v34, 0.0  ;;  %v476_v39 = vadd.f32 %v475_v36, %v376_v31 }
 0x310   :  { %v486_v42 = vmax.f32 %v476_v39, 0.0  ;;  %655 = vmatpush3.msra.mxu0 %v487_v38 }
 0x311   :  { %656 = vmatprep.subr.mxu0 %v682_v58 }
 0x312   :  { %657 = vmatpush3.msra.mxu0 %v486_v42 }
 0x313   :  { %658 = vmatprep.subr.mxu0 %v682_v58 }
 0x314   :  { %659 = vmatpush3.msra.mxu0 %v485_v43 }
 0x315   :  { %660 = vmatprep.subr.mxu0 %v682_v58 }
 0x316   :  { %661 = vmatpush3.msra.mxu0 %v484_v44 }
 0x317   :  { %663 = vmatmul.mubr.msk.f32.vlgmr.msra.gmra.mxu0 %vm268_vm3, %v488_v45 }
 0x3d7   :  { %v564_v47 = vpop.f32.mrf.mxu0 }
 0x3d8   :  { %v565_v48 = vadd.f32 %v564_v47, %v493_v46 }
 0x3d9   :  { %v664_v49 = vpop.f32.mrf.mxu0 }
 0x3da   :  { %v594_v50 = vmul.f32 -1.442695, %v565_v48  ;;  %576 = vst [vmem:[%s897_s13 + $0x8] sm:$0xf] %v565_v48 }
 0x3dc   :  { %676 = vpow2.f32 %v594_v50 }
 0x3e9   :  { %v677_v51 = vpop.eup %676 }
 0x3ea   :  { %v571_v52 = vadd.f32 1.0, %v677_v51 }
 0x3ec   :  { %678 = vrcp.f32 %v571_v52 }
 0x3f9   :  { %v679_v53 = vpop.eup %678 }
 0x3fa   :  { %574 = vst [vmem:[%s897_s13] sm:$0xf] %v679_v53 }

</bundles_post_ra>
